<compile_context>
chip_gen: v6e
topology: v6e:2x2x1
jax: 0.10.0
libtpu: 0.0.40
codegen_flags: <defaults>
</compile_context>

<pallas_src>
import jax
import jax.numpy as jnp
from jax import lax
from jax.experimental import pallas as pl
from jax.experimental.pallas import tpu as pltpu


def _round_up(x, m):
    return ((x + m - 1) // m) * m


def _gelu_tanh(x):
    # tanh-approximate GELU (EUP tanh; guaranteed Mosaic lowering).
    # TODO(synk): PyTorch nn.GELU() default is exact erf-GELU; the tanh approx
    #             differs by <~3e-4.  The reference below uses the same approx.
    c = jnp.float32(0.7978845608028654)  # sqrt(2/pi)
    return 0.5 * x * (1.0 + jnp.tanh(c * (x + 0.044715 * (x * x * x))))


# ---------------------------------------------------------------------------
# Pallas kernel: fused BN -> 1x1 conv -> GELU -> 1x1 conv -> gamma -> +residual
# ---------------------------------------------------------------------------
def mogrm_pointwise_kernel(mixed_ref, resid_ref, bn_s_ref, bn_b_ref,
                           w1_ref, b1_ref, w2_ref, b2_ref, gamma_ref, o_ref):
    # mixed_ref / resid_ref / o_ref : (C, T)  - channels on sublanes,
    #                                  T spatial positions on lanes (mult of 128)
    # bn_s/bn_b/b2/gamma : (C, 1);  b1 : (Ch, 1)
    # w1 : (Ch, C);  w2 : (C, Ch)
    x = mixed_ref[...]
    xn = x * bn_s_ref[...] + bn_b_ref[...]          # BatchNorm2d (eval), folded
    # 1x1 conv == matmul with channels as the contraction (sublane) dim.
    # (Tiny K here -> MXU is underutilized, but the kernel is HBM-bound anyway.)
    h = jnp.dot(w1_ref[...], xn, preferred_element_type=jnp.float32) + b1_ref[...]
    h = _gelu_tanh(h)
    y = jnp.dot(w2_ref[...], h.astype(w2_ref.dtype),
                preferred_element_type=jnp.float32) + b2_ref[...]
    o_ref[...] = (resid_ref[...] + gamma_ref[...] * y).astype(o_ref.dtype)


def mogrm_pointwise_pallas(mixed_nchw, resid_nchw, bn_scale, bn_shift,
                           w1, b1, w2, b2, gamma, *, tile_hw=2048):
    """Fused BN(eval) + ConvMlp(GELU) + layer-scale + residual, NCHW layout."""
    N, C, H, W = mixed_nchw.shape
    Ch = w1.shape[0]
    HW = H * W
    dtype = mixed_nchw.dtype

    # Free reshapes: stay in NCHW, spatial flattened onto the lane axis.
    mixed = mixed_nchw.reshape(N, C, HW)
    resid = resid_nchw.reshape(N, C, HW)

    # Lane-dense spatial tile: multiple of 128, as large as useful; ragged tail
    # handled by the cdiv grid (no divisibility assert).
    tile_hw = max(128, min(_round_up(tile_hw, 128), _round_up(HW, 128)))
    grid = (N, pl.cdiv(HW, tile_hw))

    col = lambda v: v.reshape(-1, 1).astype(dtype)

    flops = 2 * N * HW * (C * Ch + Ch * C) + 12 * N * HW * (C + Ch)
    bytes_accessed = (3 * N * C * HW + 2 * C * Ch + Ch + 5 * C) * dtype.itemsize
    cost = pl.CostEstimate(flops=flops, transcendentals=N * HW * Ch,
                           bytes_accessed=bytes_accessed)

    out = pl.pallas_call(
        mogrm_pointwise_kernel,
        out_shape=jax.ShapeDtypeStruct((N, C, HW), dtype),
        grid_spec=pltpu.PrefetchScalarGridSpec(
            num_scalar_prefetch=0,
            grid=grid,
            in_specs=[
                pl.BlockSpec((None, C, tile_hw), lambda n, t: (n, 0, t)),
                pl.BlockSpec((None, C, tile_hw), lambda n, t: (n, 0, t)),
                pl.BlockSpec((C, 1), lambda n, t: (0, 0)),
                pl.BlockSpec((C, 1), lambda n, t: (0, 0)),
                pl.BlockSpec((Ch, C), lambda n, t: (0, 0)),
                pl.BlockSpec((Ch, 1), lambda n, t: (0, 0)),
                pl.BlockSpec((C, Ch), lambda n, t: (0, 0)),
                pl.BlockSpec((C, 1), lambda n, t: (0, 0)),
                pl.BlockSpec((C, 1), lambda n, t: (0, 0)),
            ],
            out_specs=pl.BlockSpec((None, C, tile_hw), lambda n, t: (n, 0, t)),
        ),
        compiler_params=pltpu.CompilerParams(
            # Both axes independent -> megacore sharding on v7x (2 TCs).
            dimension_semantics=("parallel", "parallel"),
            # NOTE(v7x): blocks here are tiny; for production channel counts,
            # budget resident w1/w2 plus double-buffered (C, tile_hw) tiles
            # against 64 MiB VMEM and set vmem_limit_bytes explicitly.
        ),
        cost_estimate=cost,
    )(mixed, resid, col(bn_scale), col(bn_shift),
      w1.astype(dtype), col(b1), w2.astype(dtype), col(b2), col(gamma))

    return out.reshape(N, C, H, W)


# ---------------------------------------------------------------------------
# Token mixer (GoolgNetDWConv) — depthwise convs via XLA
# ---------------------------------------------------------------------------
def _depthwise_conv(x, w, b):
    # x: (N, C, H, W); w: (C, 1, kh, kw) (PyTorch depthwise layout); b: (C,)
    kh, kw = int(w.shape[2]), int(w.shape[3])
    out = lax.conv_general_dilated(
        x, w, window_strides=(1, 1),
        padding=((kh // 2, kh // 2), (kw // 2, kw // 2)),
        dimension_numbers=("NCHW", "OIHW", "NCHW"),
        feature_group_count=x.shape[1])
    return out + b.reshape(1, -1, 1, 1)


def googlnet_dwconv(x, p):
    N, C, H, W = x.shape
    cs = int(C * 0.125)
    c_ide = C - 4 * cs
    x_ide = x[:, :c_ide]
    x_m = x[:, c_ide:c_ide + cs]
    x_hw = x[:, c_ide + cs:c_ide + 2 * cs]
    x_hw1 = x[:, c_ide + 2 * cs:c_ide + 3 * cs]
    x_hw2 = x[:, c_ide + 3 * cs:]
    y_hw = _depthwise_conv(x_hw, p["w_hw"], p["b_hw"])
    y_hw1 = _depthwise_conv(_depthwise_conv(x_hw1, p["w_w1"], p["b_w1"]),
                            p["w_h1"], p["b_h1"])
    y_hw2 = _depthwise_conv(_depthwise_conv(x_hw2, p["w_w2"], p["b_w2"]),
                            p["w_h2"], p["b_h2"])
    y_hw3 = _depthwise_conv(x_m, p["w_hw3"], p["b_hw3"])
    return jnp.concatenate([x_ide, y_hw3, y_hw, y_hw1, y_hw2], axis=1)


# ---------------------------------------------------------------------------
# MogRM forward (Pallas) and pure-JAX reference
# ---------------------------------------------------------------------------
BN_EPS = 1e-5


def mogrm_forward(x, params, *, tile_hw=2048):
    # TODO(synk): BatchNorm2d applied in inference mode (running stats folded
    #             to per-channel scale/shift); training-mode batch statistics
    #             would need a global N*H*W reduction.
    mixed = googlnet_dwconv(x, params["mixer"])
    inv_std = lax.rsqrt(params["bn_var"] + BN_EPS)
    bn_scale = params["bn_weight"] * inv_std
    bn_shift = params["bn_bias"] - params["bn_mean"] * bn_scale
    return mogrm_pointwise_pallas(
        mixed, x, bn_scale, bn_shift,
        params["w1"], params["b1"], params["w2"], params["b2"], params["gamma"],
        tile_hw=tile_hw)


def mogrm_ref(x, params):
    mixed = googlnet_dwconv(x, params["mixer"])
    inv_std = lax.rsqrt(params["bn_var"] + BN_EPS)
    s = (params["bn_weight"] * inv_std).reshape(1, -1, 1, 1)
    t = (params["bn_bias"] - params["bn_mean"] * params["bn_weight"] * inv_std
         ).reshape(1, -1, 1, 1)
    xn = mixed * s + t
    h = jnp.einsum("nchw,oc->nohw", xn, params["w1"]) + params["b1"].reshape(1, -1, 1, 1)
    h = _gelu_tanh(h)
    y = jnp.einsum("nchw,oc->nohw", h, params["w2"]) + params["b2"].reshape(1, -1, 1, 1)
    return x + params["gamma"].reshape(1, -1, 1, 1) * y


if __name__ == "__main__":
    N, dim, H, W = 2, 8, 16, 16          # dim=8 -> cs=1, split=(4,1,1,1,1)
    hidden = 4 * dim                      # mlp_ratio = 4
    cs = int(dim * 0.125)

    key = jax.random.PRNGKey(0)
    ks = list(jax.random.split(key, 22))
    rnd = lambda k, shape, s=0.1: s * jax.random.normal(k, shape, dtype=jnp.float32)

    x = jax.random.normal(ks[0], (N, dim, H, W), dtype=jnp.float32)

    mixer = dict(
        w_hw=rnd(ks[1], (cs, 1, 7, 7)),   b_hw=rnd(ks[2], (cs,)),
        w_w1=rnd(ks[3], (cs, 1, 1, 11)),  b_w1=rnd(ks[4], (cs,)),
        w_h1=rnd(ks[5], (cs, 1, 11, 1)),  b_h1=rnd(ks[6], (cs,)),
        w_w2=rnd(ks[7], (cs, 1, 1, 11)),  b_w2=rnd(ks[8], (cs,)),
        w_h2=rnd(ks[9], (cs, 1, 11, 1)),  b_h2=rnd(ks[10], (cs,)),
        w_hw3=rnd(ks[11], (cs, 1, 3, 3)), b_hw3=rnd(ks[12], (cs,)),
    )
    params = dict(
        mixer=mixer,
        bn_weight=1.0 + rnd(ks[13], (dim,)),
        bn_bias=rnd(ks[14], (dim,)),
        bn_mean=rnd(ks[15], (dim,)),
        bn_var=jnp.abs(1.0 + rnd(ks[16], (dim,))),
        w1=rnd(ks[17], (hidden, dim)),    # fc1: Conv2d(dim, hidden, 1) weight squeezed
        b1=rnd(ks[18], (hidden,)),
        w2=rnd(ks[19], (dim, hidden)),    # fc2: Conv2d(hidden, dim, 1) weight squeezed
        b2=rnd(ks[20], (dim,)),
        # gamma is the layer-scale parameter (module init: 1e-6*ones); random
        # values here so the numeric check actually exercises the MLP path.
        gamma=0.5 + rnd(ks[21], (dim,)),
    )

    out = jax.block_until_ready(mogrm_forward(x, params))
    ref = mogrm_ref(x, params)

    assert out.shape == (N, dim, H, W)
    assert jnp.allclose(out, ref, atol=1e-5, rtol=1e-5), float(jnp.max(jnp.abs(out - ref)))
    print("KERNEL_OK")
</pallas_src>

<mosaic_0001>
module attributes {stable_mosaic.version = 11 : i64} {
  func.func @mogrm_pointwise_kernel(%arg0: i32, %arg1: i32, %arg2: memref<1x8x256xf32, #tpu.memory_space<vmem>>, %arg3: memref<1x8x256xf32, #tpu.memory_space<vmem>>, %arg4: memref<8x1xf32, #tpu.memory_space<vmem>>, %arg5: memref<8x1xf32, #tpu.memory_space<vmem>>, %arg6: memref<32x8xf32, #tpu.memory_space<vmem>>, %arg7: memref<32x1xf32, #tpu.memory_space<vmem>>, %arg8: memref<8x32xf32, #tpu.memory_space<vmem>>, %arg9: memref<8x1xf32, #tpu.memory_space<vmem>>, %arg10: memref<8x1xf32, #tpu.memory_space<vmem>>, %arg11: memref<1x8x256xf32, #tpu.memory_space<vmem>>) attributes {dimension_semantics = [#tpu.dimension_semantics<parallel>, #tpu.dimension_semantics<parallel>], iteration_bounds = array<i64: 2, 1>, scalar_prefetch = 0 : i64, scratch_operands = 0 : i64, tpu.core_type = #tpu.core_type<tc>, window_params = [{transform_indices = @transform_0, window_bounds = array<i64: 1, 8, 256>}, {transform_indices = @transform_1, window_bounds = array<i64: 1, 8, 256>}, {pipeline_mode = #tpu.pipeline_mode<synchronous>, transform_indices = @transform_2, window_bounds = array<i64: 8, 1>}, {pipeline_mode = #tpu.pipeline_mode<synchronous>, transform_indices = @transform_3, window_bounds = array<i64: 8, 1>}, {pipeline_mode = #tpu.pipeline_mode<synchronous>, transform_indices = @transform_4, window_bounds = array<i64: 32, 8>}, {pipeline_mode = #tpu.pipeline_mode<synchronous>, transform_indices = @transform_5, window_bounds = array<i64: 32, 1>}, {pipeline_mode = #tpu.pipeline_mode<synchronous>, transform_indices = @transform_6, window_bounds = array<i64: 8, 32>}, {pipeline_mode = #tpu.pipeline_mode<synchronous>, transform_indices = @transform_7, window_bounds = array<i64: 8, 1>}, {pipeline_mode = #tpu.pipeline_mode<synchronous>, transform_indices = @transform_8, window_bounds = array<i64: 8, 1>}, {transform_indices = @transform_9, window_bounds = array<i64: 1, 8, 256>}]} {
    %c0 = arith.constant 0 : index
    %c0_0 = arith.constant 0 : index
    %c0_1 = arith.constant 0 : index
    %0 = vector.load %arg2[%c0, %c0_0, %c0_1] : memref<1x8x256xf32, #tpu.memory_space<vmem>>, vector<1x8x256xf32>
    %1 = vector.shape_cast %0 : vector<1x8x256xf32> to vector<8x256xf32>
    %c0_2 = arith.constant 0 : index
    %c0_3 = arith.constant 0 : index
    %2 = vector.load %arg4[%c0_2, %c0_3] : memref<8x1xf32, #tpu.memory_space<vmem>>, vector<8x1xf32>
    %3 = vector.broadcast %2 : vector<8x1xf32> to vector<8x256xf32>
    %4 = arith.mulf %1, %3 : vector<8x256xf32>
    %c0_4 = arith.constant 0 : index
    %c0_5 = arith.constant 0 : index
    %5 = vector.load %arg5[%c0_4, %c0_5] : memref<8x1xf32, #tpu.memory_space<vmem>>, vector<8x1xf32>
    %6 = vector.broadcast %5 : vector<8x1xf32> to vector<8x256xf32>
    %7 = arith.addf %4, %6 : vector<8x256xf32>
    %c0_6 = arith.constant 0 : index
    %c0_7 = arith.constant 0 : index
    %8 = vector.load %arg6[%c0_6, %c0_7] : memref<32x8xf32, #tpu.memory_space<vmem>>, vector<32x8xf32>
    %cst = arith.constant dense<0.000000e+00> : vector<32x256xf32>
    %9 = tpu.matmul %8, %7, %cst {dimension_numbers = #tpu.dot_dimension_numbers<[1], [0], [0], [1], [0, 0, 1, 1], [], []>} : vector<32x8xf32>, vector<8x256xf32>, vector<32x256xf32> -> vector<32x256xf32>
    %c0_8 = arith.constant 0 : index
    %c0_9 = arith.constant 0 : index
    %10 = vector.load %arg7[%c0_8, %c0_9] : memref<32x1xf32, #tpu.memory_space<vmem>>, vector<32x1xf32>
    %11 = vector.broadcast %10 : vector<32x1xf32> to vector<32x256xf32>
    %12 = arith.addf %9, %11 : vector<32x256xf32>
    %cst_10 = arith.constant 5.000000e-01 : f32
    %13 = vector.broadcast %cst_10 : f32 to vector<32x256xf32>
    %14 = arith.mulf %13, %12 : vector<32x256xf32>
    %15 = arith.mulf %12, %12 : vector<32x256xf32>
    %16 = arith.mulf %15, %12 : vector<32x256xf32>
    %cst_11 = arith.constant 4.471500e-02 : f32
    %17 = vector.broadcast %cst_11 : f32 to vector<32x256xf32>
    %18 = arith.mulf %17, %16 : vector<32x256xf32>
    %19 = arith.addf %12, %18 : vector<32x256xf32>
    %cst_12 = arith.constant 0.797884583 : f32
    %20 = vector.broadcast %cst_12 : f32 to vector<32x256xf32>
    %21 = arith.mulf %20, %19 : vector<32x256xf32>
    %22 = math.tanh %21 : vector<32x256xf32>
    %cst_13 = arith.constant 1.000000e+00 : f32
    %23 = vector.broadcast %cst_13 : f32 to vector<32x256xf32>
    %24 = arith.addf %23, %22 : vector<32x256xf32>
    %25 = arith.mulf %14, %24 : vector<32x256xf32>
    %c0_14 = arith.constant 0 : index
    %c0_15 = arith.constant 0 : index
    %26 = vector.load %arg8[%c0_14, %c0_15] : memref<8x32xf32, #tpu.memory_space<vmem>>, vector<8x32xf32>
    %cst_16 = arith.constant dense<0.000000e+00> : vector<8x256xf32>
    %27 = tpu.matmul %26, %25, %cst_16 {dimension_numbers = #tpu.dot_dimension_numbers<[1], [0], [0], [1], [0, 0, 1, 1], [], []>} : vector<8x32xf32>, vector<32x256xf32>, vector<8x256xf32> -> vector<8x256xf32>
    %c0_17 = arith.constant 0 : index
    %c0_18 = arith.constant 0 : index
    %28 = vector.load %arg9[%c0_17, %c0_18] : memref<8x1xf32, #tpu.memory_space<vmem>>, vector<8x1xf32>
    %29 = vector.broadcast %28 : vector<8x1xf32> to vector<8x256xf32>
    %30 = arith.addf %27, %29 : vector<8x256xf32>
    %c0_19 = arith.constant 0 : index
    %c0_20 = arith.constant 0 : index
    %c0_21 = arith.constant 0 : index
    %31 = vector.load %arg3[%c0_19, %c0_20, %c0_21] : memref<1x8x256xf32, #tpu.memory_space<vmem>>, vector<1x8x256xf32>
    %32 = vector.shape_cast %31 : vector<1x8x256xf32> to vector<8x256xf32>
    %c0_22 = arith.constant 0 : index
    %c0_23 = arith.constant 0 : index
    %33 = vector.load %arg10[%c0_22, %c0_23] : memref<8x1xf32, #tpu.memory_space<vmem>>, vector<8x1xf32>
    %34 = vector.broadcast %33 : vector<8x1xf32> to vector<8x256xf32>
    %35 = arith.mulf %34, %30 : vector<8x256xf32>
    %36 = arith.addf %32, %35 : vector<8x256xf32>
    %c0_24 = arith.constant 0 : index
    %c0_25 = arith.constant 0 : index
    %c0_26 = arith.constant 0 : index
    %37 = vector.load %arg11[%c0_24, %c0_25, %c0_26] : memref<1x8x256xf32, #tpu.memory_space<vmem>>, vector<1x8x256xf32>
    %38 = vector.shape_cast %37 : vector<1x8x256xf32> to vector<8x256xf32>
    %39 = vector.shape_cast %36 : vector<8x256xf32> to vector<1x8x256xf32>
    tpu.vector_store %arg11[%c0_24, %c0_25, %c0_26], %39 {strides = array<i32>} : memref<1x8x256xf32, #tpu.memory_space<vmem>>, vector<1x8x256xf32>,
    return
  }
  func.func @transform_0(%arg0: i32, %arg1: i32) -> (i32, i32, i32) {
    %c0_i32 = arith.constant 0 : i32
    %c0_i32_0 = arith.constant 0 : i32
    return %arg0, %c0_i32, %arg1 : i32, i32, i32
  }
  func.func @transform_1(%arg0: i32, %arg1: i32) -> (i32, i32, i32) {
    %c0_i32 = arith.constant 0 : i32
    %c0_i32_0 = arith.constant 0 : i32
    return %arg0, %c0_i32, %arg1 : i32, i32, i32
  }
  func.func @transform_2(%arg0: i32, %arg1: i32) -> (i32, i32) {
    %c0_i32 = arith.constant 0 : i32
    %c0_i32_0 = arith.constant 0 : i32
    %c0_i32_1 = arith.constant 0 : i32
    return %c0_i32, %c0_i32_0 : i32, i32
  }
  func.func @transform_3(%arg0: i32, %arg1: i32) -> (i32, i32) {
    %c0_i32 = arith.constant 0 : i32
    %c0_i32_0 = arith.constant 0 : i32
    %c0_i32_1 = arith.constant 0 : i32
    return %c0_i32, %c0_i32_0 : i32, i32
  }
  func.func @transform_4(%arg0: i32, %arg1: i32) -> (i32, i32) {
    %c0_i32 = arith.constant 0 : i32
    %c0_i32_0 = arith.constant 0 : i32
    %c0_i32_1 = arith.constant 0 : i32
    return %c0_i32, %c0_i32_0 : i32, i32
  }
  func.func @transform_5(%arg0: i32, %arg1: i32) -> (i32, i32) {
    %c0_i32 = arith.constant 0 : i32
    %c0_i32_0 = arith.constant 0 : i32
    %c0_i32_1 = arith.constant 0 : i32
    return %c0_i32, %c0_i32_0 : i32, i32
  }
  func.func @transform_6(%arg0: i32, %arg1: i32) -> (i32, i32) {
    %c0_i32 = arith.constant 0 : i32
    %c0_i32_0 = arith.constant 0 : i32
    %c0_i32_1 = arith.constant 0 : i32
    return %c0_i32, %c0_i32_0 : i32, i32
  }
  func.func @transform_7(%arg0: i32, %arg1: i32) -> (i32, i32) {
    %c0_i32 = arith.constant 0 : i32
    %c0_i32_0 = arith.constant 0 : i32
    %c0_i32_1 = arith.constant 0 : i32
    return %c0_i32, %c0_i32_0 : i32, i32
  }
  func.func @transform_8(%arg0: i32, %arg1: i32) -> (i32, i32) {
    %c0_i32 = arith.constant 0 : i32
    %c0_i32_0 = arith.constant 0 : i32
    %c0_i32_1 = arith.constant 0 : i32
    return %c0_i32, %c0_i32_0 : i32, i32
  }
  func.func @transform_9(%arg0: i32, %arg1: i32) -> (i32, i32, i32) {
    %c0_i32 = arith.constant 0 : i32
    %c0_i32_0 = arith.constant 0 : i32
    return %arg0, %c0_i32, %arg1 : i32, i32, i32
  }
}

</mosaic_0001>

<bundles_post_ra>
// kernel: tpu_custom_call.1
= control target key start
LH: loop header
LB: loop body
LE: loop exit
PB: predicated region body
PF: predicated region fallthrough
CT: control target
= control target key end

     0   :  { %s1237_s0 = inlined_call_operand.vmem [shape: f32[2,8,256], index: 0, kind: input, shape index: {}]   ;;  %s1238_s1 = inlined_call_operand.vmem [shape: f32[2,8,256], index: 1, kind: input, shape index: {}]   ;;  %s1239_s2 = inlined_call_operand.vmem [shape: f32[8,1], index: 2, kind: input, shape index: {}]   ;;  %s1240_s3 = inlined_call_operand.vmem [shape: f32[8,1], index: 3, kind: input, shape index: {}]   ;;  %s1241_s4 = inlined_call_operand.vmem [shape: f32[32,8], index: 4, kind: input, shape index: {}]   ;;  %s1242_s5 = inlined_call_operand.vmem [shape: f32[32,1], index: 5, kind: input, shape index: {}]   ;;  %s1243_s6 = inlined_call_operand.vmem [shape: f32[8,32], index: 6, kind: input, shape index: {}]   ;;  %s1244_s7 = inlined_call_operand.vmem [shape: f32[8,1], index: 7, kind: input, shape index: {}]   ;;  %s1245_s8 = inlined_call_operand.vmem [shape: f32[8,1], index: 8, kind: input, shape index: {}]   ;;  %s1246_s9 = inlined_call_operand.hbm [shape: f32[2,8,256], index: 9, kind: output, shape index: {}]  }
   0x1   :  { %1247 = sst [smem:[#allocation5_spill]] %s1237_s0 }
   0x2   :  { %14 = vsyncpa [#allocation3], 0 }
   0x3   :  { %16 = vsyncpa [#allocation3 + $0x1], 0  ;;  %s1054_s30 = smov 0   ;;  %s1056_s10 = smov 0  }
   0x4   :  { %s1058_s11 = smov 0   ;;  %s1060_s12 = smov 0  }
   0x5   :  { %s1062_s13 = smov 0   ;;  %s1064_s14 = smov 0  }
   0x6 LB: > { %s825_s15 = sadd.s32 4294967295, %s999_s14   ;;  %s826_s16 = sadd.s32 4294967294, %s999_s14   ;;  %s999_s14 = sphi %s1064_s14, %s22_s14   ;;  %s995_s13 = sphi %s1062_s13, %s1255_s13   ;;  %s991_s12 = sphi %s1060_s12, %s1254_s12   ;;  %s987_s11 = sphi %s1058_s11, %s1253_s11   ;;  %s983_s10 = sphi %s1056_s10, %s1252_s10   ;;  %s979_s30 = sphi %s1054_s30, %s1251_s30  }
   0x7   : > { %s34_s17 = sadd.s32 1, %s995_s13  ;;  %s246_s18 = sadd.s32 1, %s987_s11 }
   0x8   : > { %p36_p0 = scmp.ge.s32.totalorder %s34_s17, 2  ;;  %p256_p1 = scmp.ne.s32.totalorder %s987_s11, %s983_s10 }
   0x9   : > { %p257_p2 = scmp.eq.s32.totalorder %s825_s15, 1  ;;  %p262_p3 = scmp.ne.s32.totalorder %s983_s10, %s979_s30 }
   0xa   : > { %s1257_s17 = smov (%p36_p0, %s34_s17), 0  ;;  %p263_p5 = scmp.eq.s32.totalorder %s826_s16, 1 }
   0xb   : > { %p1094_p4 = por %p257_p2, %p256_p1  ;;  %s241_s20 = ssub.s32 %s995_s13, %s1257_s17 }
   0xc   : > { %p829_p6 = scmp.ge.s32.totalorder %s999_s14, 1  ;;  %p244_p7 = scmp.eq.s32.totalorder %s241_s20, 0 }
   0xd   : > { %p1101_p8 = por %p263_p5, %p262_p3  ;;  %p328_p9 = scmp.lt.s32.totalorder %s999_s14, 3 }
   0xe   : > { %s1107_s22 = scalar_select %p244_p7, %s987_s11, %s246_s18  }
   0xf   : > { %p329_p10 = pnand %p829_p6, %p328_p9 }
  0x10   : > { %p378_p11 = scmp.lt.s32.totalorder (!%p329_p10), %s991_s12, 1  ;;  %s1250_s0 = sld [smem:[#allocation5_spill]] (!%p329_p10) }
  0x11   : > { %332 = sbr.rel (%p329_p10) target bundleno = 615 (0x267), region = 56  ;;  %s374_s23 = sand.u32 (!%p329_p10), 1, %s983_s10  }
  0x12   : > { %s830_s24 = sshll.u32 (!%p329_p10), %s374_s23, 4  ;;  %s847_s15 = sshll.u32 (!%p329_p10), %s991_s12, 8 }
  0x13   : > { %s376_s16 = scalar_lea.vmem (!%p329_p10), [#allocation2], %s830_s24  ;;  %s715_s25 = scalar_lea.sflag (!%p329_p10), [#allocation3], %s374_s23 }
  0x16   : > { %v400_v0 = vld [vmem:[%s1239_s2] sm:$0xff]  ;;  %v1001_v1 = vmov 0   ;;  %v1002_v3 = vmov 0.0   ;;  %v421_v4 = vld [vmem:[%s1242_s5 + $0x8] sm:$0xff]  ;;  %v423_v6 = vld [vmem:[%s1242_s5 + $0x18] sm:$0xff]  ;;  %s1135_s28 = scalar_select %p378_p11, %s991_s12, 1 }
  0x17   : > { %905 = vset.pattern.permute.xlu0 %v1001_v1  ;;  %906 = vset.pattern.permute.xlu1 %v1001_v1  ;;  %v408_v2 = vld [vmem:[%s1240_s3] sm:$0xff]  ;;  %v422_v7 = vld [vmem:[%s1242_s5 + $0x10] sm:$0xff]  ;;  %vm444_vm0 = vcmask 64512   ;;  %v417_v19 = vld [vmem:[%s1241_s4 + $0x8] sm:$0xff]  ;;  %vm625_vm1 = vcmask 261120  }
  0x18   : > { %403 = vperm.xlu0 %905, %v400_v0   ;;  %521 = vmatprep.mubr.f32.mxu0 %v1002_v3  ;;  %v619_v5 = vld [vmem:[%s1244_s7] sm:$0xff]  ;;  %s845_s29 = sshll.u32 %s1135_s28, 4  ;;  %v418_v20 = vld [vmem:[%s1241_s4 + $0x10] sm:$0xff]  ;;  %v419_v21 = vld [vmem:[%s1241_s4 + $0x18] sm:$0xff] }
  0x19   : > { %693 = vmatprep.mubr.f32.mxu1 %v1002_v3  ;;  %441 = vperm.xlu1 %906, %v423_v6   ;;  %v420_v8 = vld [vmem:[%s1242_s5] sm:$0xff]  ;;  %s385_s18 = scalar_lea.vmem %s1250_s0, %s845_s29  ;;  %s395_s27 = scalar_lea.vmem %s1238_s1, %s845_s29 }
  0x1a   : > { %v702_v9 = vld [vmem:[%s1245_s8] sm:$0xff]  ;;  %v399_v12 = vld [vmem:[%s385_s18 + $0x8] sm:$0xff]  ;;  %s729_s29 = scalar_lea.hbm %s1246_s9, %s847_s15 }
  0x1b   : > { %v398_v11 = vld [vmem:[%s385_s18] sm:$0xff]  ;;  %s731_s18 = sshll.u32 %s376_s16, 4  ;;  %s732_s18 = int_to_ptr.vmem [resolvable:$true] %s731_s18 }
  0x1c   : > { %411 = vperm.xlu0 %905, %v408_v2   ;;  %v416_v18 = vld [vmem:[%s1241_s4] sm:$0xff]  ;;  %s923_s26 = scalar_lea.vmem %s732_s18, 256 }
  0x1d   : > { %436 = vperm.xlu1 %906, %v422_v7   ;;  %p924_p12 = scmp.ne.s32.totalorder %s732_s18, %s923_s26 }
  0x1f   : > { %p925_p13 = pnand %p924_p12, %p1094_p4 }
  0x20   : > { %431 = vperm.xlu0 %905, %v421_v4  }
  0x21   : > { %426 = vperm.xlu1 %906, %v420_v8   ;;  %p926_p0 = pneg %p925_p13 }
  0x24   : > { %622 = vperm.xlu0 %905, %v619_v5  }
  0x25   : > { %705 = vperm.xlu1 %906, %v702_v9  }
  0x93   : > { %v404_v10 = vpop.permute.xlu0 %403 }
  0x94   : > { %v406_v13 = vmul.f32 %v404_v10, %v398_v11  ;;  %v407_v14 = vmul.f32 %v404_v10, %v399_v12  ;;  %v442_v22 = vpop.permute.xlu1 %441 }
  0x97   : > { %v412_v15 = vpop.permute.xlu0 %411 }
  0x98   : > { %v415_v16 = vadd.f32 %v412_v15, %v407_v14  ;;  %v414_v17 = vadd.f32 %v412_v15, %v406_v13  ;;  %v437_v23 = vpop.permute.xlu1 %436 }
  0x9a   : > { %487 = vmatprep.subr.mxu0 %v415_v16 }
  0x9b   : > { %488 = vmatpush1.msra.mxu0 %v414_v17  ;;  %v432_v27 = vpop.permute.xlu0 %431 }
  0x9c   : > { %835 = vmatmul.mubr.msk.f32.vlgmr.msra.gmra.mxu0 %vm444_vm0, %v416_v18  ;;  %v427_v26 = vpop.permute.xlu1 %426 }
  0x9d   : > { %527 = vmatprep.mubr.f32.mxu0 %v1002_v3 }
  0xa0   : > { %836 = vmatmul.mubr.msk.f32.gmra.mxu0 %vm444_vm0, %v417_v19 }
  0xa1   : > { %533 = vmatprep.mubr.f32.mxu0 %v1002_v3 }
  0xa4   : > { %837 = vmatmul.mubr.msk.f32.gmra.mxu0 %vm444_vm0, %v418_v20 }
  0xa5   : > { %539 = vmatprep.mubr.f32.mxu0 %v1002_v3 }
  0xa8   : > { %838 = vmatmul.mubr.msk.f32.gmra.mxu0 %vm444_vm0, %v419_v21 }
 0x15c   : > { %v523_v24 = vpop.f32.mrf.mxu0 }
 0x15d   : > { %v1159_v31 = vadd.f32 %v523_v24, %v427_v26 }
 0x15e   : > { %v525_v25 = vpop.f32.mrf.mxu0 }
 0x15f   : > { %v1155_v29 = vadd.f32 %v525_v25, %v427_v26  ;;  %v554_v38 = vmul.f32 %v1159_v31, %v1159_v31 }
 0x160   : > { %v529_v28 = vpop.f32.mrf.mxu0 }
 0x161   : > { %v1157_v30 = vadd.f32 %v529_v28, %v432_v27  ;;  %v555_v36 = vmul.f32 %v1155_v29, %v1155_v29  ;;  %v562_v49 = vmul.f32 %v554_v38, %v1159_v31 }
 0x162   : > { %v531_v32 = vpop.f32.mrf.mxu0 }
 0x163   : > { %v1161_v33 = vadd.f32 %v531_v32, %v432_v27  ;;  %v556_v34 = vmul.f32 %v1157_v30, %v1157_v30  ;;  %v563_v46 = vmul.f32 %v555_v36, %v1155_v29  ;;  %v570_v62 = vmul.f32 0.044715, %v562_v49 }
 0x164   : > { %v535_v35 = vpop.f32.mrf.mxu0  ;;  %v548_v49 = vmul.f32 0.5, %v1157_v30 }
 0x165   : > { %v557_v37 = vmul.f32 %v1161_v33, %v1161_v33  ;;  %v1171_v39 = vadd.f32 %v535_v35, %v437_v23  ;;  %v564_v42 = vmul.f32 %v556_v34, %v1157_v30  ;;  %v571_v59 = vmul.f32 0.044715, %v563_v46 }
 0x166   : > { %v537_v40 = vpop.f32.mrf.mxu0  ;;  %v578_v9 = vadd.f32 %v570_v62, %v1159_v31 }
 0x167   : > { %v565_v41 = vmul.f32 %v557_v37, %v1161_v33  ;;  %v558_v43 = vmul.f32 %v1171_v39, %v1171_v39  ;;  %v538_v44 = vadd.f32 %v537_v40, %v437_v23  ;;  %v572_v56 = vmul.f32 0.044715, %v564_v42 }
 0x168   : > { %v541_v45 = vpop.f32.mrf.mxu0  ;;  %v579_v6 = vadd.f32 %v571_v59, %v1155_v29  ;;  %v586_v17 = vmul.f32 0.7978846, %v578_v9  ;;  %v701_v59 = vld [vmem:[%s395_s27 + $0x8] sm:$0xff] }
 0x169   : > { %v573_v47 = vmul.f32 0.044715, %v565_v41  ;;  %v542_v48 = vadd.f32 %v541_v45, %v442_v22  ;;  %v566_v50 = vmul.f32 %v558_v43, %v1171_v39  ;;  %v559_v51 = vmul.f32 %v538_v44, %v538_v44 }
 0x16a   : > { %v543_v52 = vpop.f32.mrf.mxu0  ;;  %v580_v4 = vadd.f32 %v572_v56, %v1157_v30  ;;  %v587_v15 = vmul.f32 0.7978846, %v579_v6  ;;  %v551_v37 = vmul.f32 0.5, %v538_v44  ;;  %v550_v41 = vmul.f32 0.5, %v1171_v39 }
 0x16b   : > { %v581_v53 = vadd.f32 %v573_v47, %v1161_v33  ;;  %v560_v54 = vmul.f32 %v542_v48, %v542_v48  ;;  %v544_v55 = vadd.f32 %v543_v52, %v442_v22  ;;  %v574_v57 = vmul.f32 0.044715, %v566_v50 }
 0x16c   : > { %v567_v58 = vmul.f32 %v559_v51, %v538_v44  ;;  %v588_v14 = vmul.f32 0.7978846, %v580_v4  ;;  %v552_v32 = vmul.f32 0.5, %v542_v48  ;;  %v549_v45 = vmul.f32 0.5, %v1161_v33 }
 0x16d   : > { %v568_v60 = vmul.f32 %v560_v54, %v542_v48  ;;  %v561_v61 = vmul.f32 %v544_v55, %v544_v55  ;;  %v582_v63 = vadd.f32 %v574_v57, %v1171_v39  ;;  %v589_v1 = vmul.f32 0.7978846, %v581_v53  ;;  %v618_v53 = vld [vmem:[%s1243_s6] sm:$0xff]  ;;  %v706_v54 = vpop.permute.xlu1 %705 }
 0x16e   : > { %v575_v0 = vmul.f32 0.044715, %v567_v58  ;;  %v553_v25 = vmul.f32 0.5, %v544_v55  ;;  %v546_v39 = vmul.f32 0.5, %v1159_v31 }
 0x16f   : > { %v576_v2 = vmul.f32 0.044715, %v568_v60  ;;  %v569_v3 = vmul.f32 %v561_v61, %v544_v55  ;;  %v590_v10 = vmul.f32 0.7978846, %v582_v63  ;;  %907 = vtanh.f32 %v589_v1 }
 0x170   : > { %v583_v5 = vadd.f32 %v575_v0, %v538_v44  ;;  %v547_v44 = vmul.f32 0.5, %v1155_v29  ;;  %v623_v29 = vpop.permute.xlu0 %622 }
 0x171   : > { %v577_v7 = vmul.f32 0.044715, %v569_v3  ;;  %v584_v8 = vadd.f32 %v576_v2, %v542_v48 }
 0x172   : > { %v591_v11 = vmul.f32 0.7978846, %v583_v5 }
 0x173   : > { %v585_v12 = vadd.f32 %v577_v7, %v544_v55  ;;  %v592_v13 = vmul.f32 0.7978846, %v584_v8  ;;  %v700_v55 = vld [vmem:[%s395_s27] sm:$0xff]  ;;  %s1003_s27 = smov [#allocation2]  }
 0x174   : > { %909 = vtanh.f32 %v591_v11  ;;  %s927_s12 = sshll.u32 %s1003_s27, 4  ;;  %s928_s12 = int_to_ptr.vmem [resolvable:$false] %s927_s12 }
 0x175   : > { %v593_v16 = vmul.f32 0.7978846, %v585_v12  ;;  %911 = vtanh.f32 %v592_v13  ;;  %s929_s24 = scalar_lea.vmem %s928_s12, 512  ;;  %p930_p1 = scmp.lt.s32.totalorder %s732_s18, %s928_s12 }
 0x176   : > { %913 = vtanh.f32 %v590_v10  ;;  %p931_p2 = scmp.lt.s32.totalorder %s929_s24, %s923_s26 }
 0x177   : > { %915 = vtanh.f32 %v593_v16 }
 0x178   : > { %917 = vtanh.f32 %v588_v14  ;;  %p932_p3 = por %p931_p2, %p930_p1 }
 0x179   : > { %919 = vtanh.f32 %v587_v15 }
 0x17a   : > { %921 = vtanh.f32 %v586_v17  ;;  %p933_p5 = pnand %p932_p3, %p926_p0 }
 0x17c   : > { %v908_v18 = vpop.eup %907 }
 0x17d   : > { %v605_v38 = vadd.f32 1.0, %v908_v18 }
 0x17f   : > { %v613_v48 = vmul.f32 %v605_v38, %v549_v45 }
 0x181   : > { %v910_v19 = vpop.eup %909 }
 0x182   : > { %v912_v20 = vpop.eup %911  ;;  %v607_v27 = vadd.f32 1.0, %v910_v19 }
 0x183   : > { %v914_v21 = vpop.eup %913  ;;  %v608_v23 = vadd.f32 1.0, %v912_v20 }
 0x184   : > { %v916_v22 = vpop.eup %915  ;;  %v606_v34 = vadd.f32 1.0, %v914_v21  ;;  %v615_v43 = vmul.f32 %v607_v27, %v551_v37 }
 0x185   : > { %v918_v24 = vpop.eup %917  ;;  %v609_v26 = vadd.f32 1.0, %v916_v22  ;;  %v616_v40 = vmul.f32 %v608_v23, %v552_v32 }
 0x186   : > { %v920_v28 = vpop.eup %919  ;;  %v604_v42 = vadd.f32 1.0, %v918_v24  ;;  %v614_v47 = vmul.f32 %v606_v34, %v550_v41 }
 0x187   : > { %v922_v35 = vpop.eup %921  ;;  %v617_v36 = vmul.f32 %v609_v26, %v553_v25  ;;  %v603_v46 = vadd.f32 1.0, %v920_v28 }
 0x188   : > { %v602_v50 = vadd.f32 1.0, %v922_v35  ;;  %v612_v51 = vmul.f32 %v604_v42, %v548_v49 }
 0x189   : > { %653 = vmatprep.subr.mxu1 %v617_v36  ;;  %v611_v52 = vmul.f32 %v603_v46, %v547_v44 }
 0x18a   : > { %654 = vmatpush1.msra.mxu1 %v616_v40  ;;  %v610_v33 = vmul.f32 %v602_v50, %v546_v39 }
 0x18b   : > { %655 = vmatprep.subr.mxu1 %v615_v43 }
 0x18c   : > { %656 = vmatpush1.msra.mxu1 %v614_v47 }
 0x18d   : > { %657 = vmatprep.subr.mxu1 %v613_v48 }
 0x18e   : > { %658 = vmatpush1.msra.mxu1 %v612_v51 }
 0x18f   : > { %659 = vmatprep.subr.mxu1 %v611_v52 }
 0x190   : > { %660 = vmatpush1.msra.mxu1 %v610_v33 }
 0x191   : > { %839 = vmatmul.mubr.msk.f32.vlgmr.msra.gmra.mxu1 %vm625_vm1, %v618_v53 }
 0x251   : > { %v695_v30 = vpop.f32.mrf.mxu1 }
 0x252   : > { %v696_v31 = vadd.f32 %v695_v30, %v623_v29 }
 0x253   : > { %v697_v56 = vpop.f32.mrf.mxu1 }
 0x254   : > { %v708_v57 = vmul.f32 %v706_v54, %v696_v31  ;;  %v698_v58 = vadd.f32 %v697_v56, %v623_v29 }
 0x256   : > { %v710_v60 = vadd.f32 %v708_v57, %v700_v55  ;;  %v709_v61 = vmul.f32 %v706_v54, %v698_v58 }
 0x258   : > { %v711_v62 = vadd.f32 %v709_v61, %v701_v59  ;;  %712 = vst [vmem:[%s376_s16] sm:$0xff] %v710_v60 }
 0x25a   : > { %713 = vst [vmem:[%s376_s16 + $0x8] sm:$0xff] %v711_v62 }
 0x25b   : > { %936 = shalt.err (!%p933_p5)
}
 0x25c   : > { %s937_s0 = scalar_lea.hbm %s729_s29, 256  ;;  %s941_s16 = scalar_lea.hbm %s1246_s9, 512 }
 0x25d   : > { %p938_p6 = scmp.ne.s32.totalorder %s729_s29, %s937_s0  ;;  %p942_p10 = scmp.lt.s32.totalorder %s729_s29, %s1246_s9 }
 0x25e   : > { %p943_p11 = scmp.lt.s32.totalorder %s941_s16, %s937_s0 }
 0x25f   : > { %p939_p7 = pnand %p938_p6, %p1094_p4 }
 0x260   : > { %p944_p12 = por %p943_p11, %p942_p10 }
 0x261   : > { %p940_p9 = pneg %p939_p7 }
 0x263   : > { %p945_p13 = pnand %p944_p12, %p940_p9 }
 0x265   : > { %948 = shalt.err (!%p945_p13)
}
 0x266   : > { %848 = dma.vmem_to_hbm [thread:$0]  (%p1094_p4), %s732_s18, 256, %s729_s29, %s715_s25  }
 0x267 PF: > { %p854_p0 = scmp.ge.s32.totalorder %s999_s14, 2  ;;  %s743_s26 = sand.u32 1, %s979_s30  }
 0x268   : > { %s744_s27 = scalar_lea.sflag [#allocation3], %s743_s26 }
 0x269   : > { %p851_p1 = pnand %p854_p0, %p1101_p8 }
 0x26b   : > { %p852_p2 = pneg %p851_p1 }
 0x26d   : > { %974 = dma.done.wait (%p852_p2), %s744_s27, 256  }
 0x26e   : > { %976 = vsyncadd (%p852_p2), %s744_s27, 4294967040  ;;  %s22_s14 = sadd.s32 1, %s999_s14   ;;  %s1251_s30 = smov %s983_s10 }
 0x26f   : > { %p19_p3 = scmp.ge.s32.totalorder %s22_s14, 4   ;;  %s1252_s10 = smov %s987_s11 }
 0x270   : > { %s1253_s11 = smov %s1107_s22  ;;  %s1254_s12 = smov %s995_s13 }
 0x271   : > { %s1255_s13 = smov %s1257_s17  ;;  %21 = sbr.rel (!%p19_p3) target bundleno = 6 (0x6), region = 94 }
 0x276   :  { %749 = vsyncpa [#allocation3], 1 }
 0x277   :  { %751 = vsyncpa [#allocation3 + $0x1], 1 }

</bundles_post_ra>
